<compile_context>
chip_gen: v7x
topology: tpu7x:2x2x1
jax: 0.10.0
libtpu: 0.0.40
codegen_flags: <defaults>
</compile_context>

<pallas_src>
import functools
import math

import jax
import jax.numpy as jnp
from jax.experimental import pallas as pl
from jax.experimental.pallas import tpu as pltpu

H_PAD = 128  # hidden width padded to a full 128-lane vreg / MXU column set


def _round_up(n, m):
    return (n + m - 1) // m * m


def _hidden_tanh_dtype():
    """bf16 tanh on chips with a bf16 EUP (v6e/v7x); f32 on v5e and older."""
    try:
        kind = jax.devices()[0].device_kind.lower()
    except Exception:
        kind = ""
    if any(t in kind for t in ("v2", "v3", "v4", "v5")):
        return jnp.float32
    return jnp.bfloat16


def policy_mlp_kernel(x_ref, w1_ref, b1_ref, w2_ref, b2_ref, w3_ref, b3_ref,
                      o_ref, *, hidden_tanh_dtype):
    """Three fused layers: bf16 matmul -> f32 MXU accumulate -> bias -> tanh."""
    x = x_ref[...]                                                   # (tb, n_states) bf16
    z1 = jnp.dot(x, w1_ref[...], preferred_element_type=jnp.float32) + b1_ref[...]
    h1 = jnp.tanh(z1.astype(hidden_tanh_dtype)).astype(jnp.bfloat16)
    z2 = jnp.dot(h1, w2_ref[...], preferred_element_type=jnp.float32) + b2_ref[...]
    h2 = jnp.tanh(z2.astype(hidden_tanh_dtype)).astype(jnp.bfloat16)
    z3 = jnp.dot(h2, w3_ref[...], preferred_element_type=jnp.float32) + b3_ref[...]
    o_ref[...] = jnp.tanh(z3).astype(o_ref.dtype)                    # final tanh in f32


def init_policy_params(key, n_states, n_actions, n_hidden=64):
    """Mirror PyTorch nn.Linear default init: U(-1/sqrt(fan_in), 1/sqrt(fan_in)).
    Weights are stored transposed vs PyTorch, i.e. (in_features, out_features)."""
    def linear(k, fan_in, fan_out):
        kw, kb = jax.random.split(k)
        bound = 1.0 / math.sqrt(fan_in)
        w = jax.random.uniform(kw, (fan_in, fan_out), jnp.float32, -bound, bound)
        b = jax.random.uniform(kb, (1, fan_out), jnp.float32, -bound, bound)
        return w, b

    k1, k2, k3 = jax.random.split(key, 3)
    w1, b1 = linear(k1, n_states, n_hidden)
    w2, b2 = linear(k2, n_hidden, n_hidden)
    w3, b3 = linear(k3, n_hidden, n_actions)
    return {"w1": w1, "b1": b1, "w2": w2, "b2": b2, "w3": w3, "b3": b3}


def prepare_kernel_params(params):
    """Zero-pad the hidden width to 128 lanes and cast weights to bf16.

    Padded hidden columns get zero weights + zero bias -> tanh(0) = 0, so they
    contribute nothing downstream. The output layer keeps its true width
    (n_actions) so the kernel writes only real columns."""
    def pad2(a, rows, cols):
        return jnp.pad(a, ((0, rows - a.shape[0]), (0, cols - a.shape[1])))

    n_states = params["w1"].shape[0]
    n_actions = params["w3"].shape[1]
    return {
        "w1": pad2(params["w1"], n_states, H_PAD).astype(jnp.bfloat16),
        "b1": pad2(params["b1"], 1, H_PAD).astype(jnp.float32),
        "w2": pad2(params["w2"], H_PAD, H_PAD).astype(jnp.bfloat16),
        "b2": pad2(params["b2"], 1, H_PAD).astype(jnp.float32),
        "w3": pad2(params["w3"], H_PAD, n_actions).astype(jnp.bfloat16),
        "b3": params["b3"].astype(jnp.float32),
    }


@functools.partial(jax.jit, static_argnames=("tb",))
def policy_net_forward(x, kparams, tb=1024):
    """x: (B, n_states) float. kparams: output of prepare_kernel_params.
    Returns (B, n_actions) float32."""
    B, n_states = x.shape
    n_actions = kparams["w3"].shape[1]

    # Batch tile: multiple of 8 sublanes, at most tb. Cap so the grid has >= 2
    # steps whenever B >= 16, letting v7x's two TensorCores both get work.
    b8 = _round_up(B, 8)
    tb_eff = min(tb, b8)
    if b8 >= 16:
        tb_eff = min(tb_eff, _round_up((b8 + 1) // 2, 8))
    tb_eff = max(8, _round_up(tb_eff, 8))
    grid = (pl.cdiv(B, tb_eff),)  # ragged last block: OOB rows are masked

    x = x.astype(jnp.bfloat16)  # bf16 x: half the input DMA; matmul LHS is bf16 anyway

    w1, b1 = kparams["w1"], kparams["b1"]
    w2, b2 = kparams["w2"], kparams["b2"]
    w3, b3 = kparams["w3"], kparams["b3"]

    def full(a):  # weights/biases: single full block, VMEM-resident across grid steps
        return pl.BlockSpec(a.shape, lambda i: (0, 0))

    kernel = functools.partial(policy_mlp_kernel,
                               hidden_tanh_dtype=_hidden_tanh_dtype())

    return pl.pallas_call(
        kernel,
        out_shape=jax.ShapeDtypeStruct((B, n_actions), jnp.float32),
        grid=grid,
        in_specs=[
            pl.BlockSpec((tb_eff, n_states), lambda i: (i, 0)),  # x batch tile
            full(w1), full(b1), full(w2), full(b2), full(w3), full(b3),
        ],
        out_specs=pl.BlockSpec((tb_eff, n_actions), lambda i: (i, 0)),
        compiler_params=pltpu.CompilerParams(
            dimension_semantics=("parallel",),      # shard batch across TCs on v7x
            vmem_limit_bytes=16 * 1024 * 1024,      # ample; well under v7x's 64 MiB
        ),
    )(x, w1, b1, w2, b2, w3, b3)


def policy_net_forward_ref_f32(x, p):
    """Pure-JAX f32 reference (original PyTorch precision)."""
    h = jnp.tanh(x @ p["w1"] + p["b1"])
    h = jnp.tanh(h @ p["w2"] + p["b2"])
    return jnp.tanh(h @ p["w3"] + p["b3"])


def policy_net_forward_ref_bf16(x, kp):
    """Pure-JAX reference mirroring the kernel's padded bf16 arithmetic."""
    hdt = _hidden_tanh_dtype()
    xb = x.astype(jnp.bfloat16)
    z1 = jnp.dot(xb, kp["w1"], preferred_element_type=jnp.float32) + kp["b1"]
    h1 = jnp.tanh(z1.astype(hdt)).astype(jnp.bfloat16)
    z2 = jnp.dot(h1, kp["w2"], preferred_element_type=jnp.float32) + kp["b2"]
    h2 = jnp.tanh(z2.astype(hdt)).astype(jnp.bfloat16)
    z3 = jnp.dot(h2, kp["w3"], preferred_element_type=jnp.float32) + kp["b3"]
    return jnp.tanh(z3)


if __name__ == "__main__":
    # Two-link arm policy: small state, 2 actions, 64 hidden (module default).
    n_states, n_actions, n_hidden = 6, 2, 64

    key = jax.random.PRNGKey(0)
    k_params, k_x = jax.random.split(key)
    params = init_policy_params(k_params, n_states, n_actions, n_hidden)
    kparams = prepare_kernel_params(params)

    # batch=8: single tile; batch=20: two grid steps + ragged (masked) last block.
    for batch in (8, 20):
        x = jax.random.normal(jax.random.fold_in(k_x, batch),
                              (batch, n_states), dtype=jnp.float32)
        out = jax.block_until_ready(policy_net_forward(x, kparams))
        assert out.shape == (batch, n_actions)

        # Check vs a pure-JAX forward with the same padded bf16 arithmetic.
        ref_bf16 = policy_net_forward_ref_bf16(x, kparams)
        assert jnp.allclose(out, ref_bf16, atol=2e-2, rtol=2e-2), "mismatch vs bf16 reference"

        # Loose check vs the original f32 model (bf16 weights/activations round).
        ref_f32 = policy_net_forward_ref_f32(x, params)
        assert jnp.allclose(out, ref_f32, atol=5e-2, rtol=5e-2), "mismatch vs f32 reference"

    # TODO(synk): getAction's MultivariateNormal sampling / log_prob is RL glue
    # outside the module's forward pass and is not implemented as a kernel.

    print("KERNEL_OK")
</pallas_src>

<mosaic_0001>
module attributes {stable_mosaic.version = 11 : i64} {
  func.func @policy_mlp_kernel(%arg0: i32, %arg1: memref<8x6xbf16, #tpu.memory_space<vmem>>, %arg2: memref<6x128xbf16, #tpu.memory_space<vmem>>, %arg3: memref<1x128xf32, #tpu.memory_space<vmem>>, %arg4: memref<128x128xbf16, #tpu.memory_space<vmem>>, %arg5: memref<1x128xf32, #tpu.memory_space<vmem>>, %arg6: memref<128x2xbf16, #tpu.memory_space<vmem>>, %arg7: memref<1x2xf32, #tpu.memory_space<vmem>>, %arg8: memref<8x2xf32, #tpu.memory_space<vmem>>) attributes {dimension_semantics = [#tpu.dimension_semantics<parallel>], iteration_bounds = array<i64: 1>, scalar_prefetch = 0 : i64, scratch_operands = 0 : i64, tpu.core_type = #tpu.core_type<tc>, window_params = [{transform_indices = @transform_0, window_bounds = array<i64: 8, 6>}, {pipeline_mode = #tpu.pipeline_mode<synchronous>, transform_indices = @transform_1, window_bounds = array<i64: 6, 128>}, {pipeline_mode = #tpu.pipeline_mode<synchronous>, transform_indices = @transform_2, window_bounds = array<i64: 1, 128>}, {pipeline_mode = #tpu.pipeline_mode<synchronous>, transform_indices = @transform_3, window_bounds = array<i64: 128, 128>}, {pipeline_mode = #tpu.pipeline_mode<synchronous>, transform_indices = @transform_4, window_bounds = array<i64: 1, 128>}, {pipeline_mode = #tpu.pipeline_mode<synchronous>, transform_indices = @transform_5, window_bounds = array<i64: 128, 2>}, {pipeline_mode = #tpu.pipeline_mode<synchronous>, transform_indices = @transform_6, window_bounds = array<i64: 1, 2>}, {transform_indices = @transform_7, window_bounds = array<i64: 8, 2>}]} {
    %c0 = arith.constant 0 : index
    %c0_0 = arith.constant 0 : index
    %0 = vector.load %arg1[%c0, %c0_0] : memref<8x6xbf16, #tpu.memory_space<vmem>>, vector<8x6xbf16>
    %c0_1 = arith.constant 0 : index
    %c0_2 = arith.constant 0 : index
    %1 = vector.load %arg2[%c0_1, %c0_2] : memref<6x128xbf16, #tpu.memory_space<vmem>>, vector<6x128xbf16>
    %cst = arith.constant dense<0.000000e+00> : vector<8x128xf32>
    %2 = tpu.matmul %0, %1, %cst {dimension_numbers = #tpu.dot_dimension_numbers<[1], [0], [0], [1], [0, 0, 1, 1], [], []>} : vector<8x6xbf16>, vector<6x128xbf16>, vector<8x128xf32> -> vector<8x128xf32>
    %c0_3 = arith.constant 0 : index
    %c0_4 = arith.constant 0 : index
    %3 = vector.load %arg3[%c0_3, %c0_4] : memref<1x128xf32, #tpu.memory_space<vmem>>, vector<1x128xf32>
    %4 = vector.broadcast %3 : vector<1x128xf32> to vector<8x128xf32>
    %5 = arith.addf %2, %4 : vector<8x128xf32>
    %6 = arith.truncf %5 : vector<8x128xf32> to vector<8x128xbf16>
    %7 = math.tanh %6 : vector<8x128xbf16>
    %c0_5 = arith.constant 0 : index
    %c0_6 = arith.constant 0 : index
    %8 = vector.load %arg4[%c0_5, %c0_6] : memref<128x128xbf16, #tpu.memory_space<vmem>>, vector<128x128xbf16>
    %cst_7 = arith.constant dense<0.000000e+00> : vector<8x128xf32>
    %9 = tpu.matmul %7, %8, %cst_7 {dimension_numbers = #tpu.dot_dimension_numbers<[1], [0], [0], [1], [0, 0, 1, 1], [], []>} : vector<8x128xbf16>, vector<128x128xbf16>, vector<8x128xf32> -> vector<8x128xf32>
    %c0_8 = arith.constant 0 : index
    %c0_9 = arith.constant 0 : index
    %10 = vector.load %arg5[%c0_8, %c0_9] : memref<1x128xf32, #tpu.memory_space<vmem>>, vector<1x128xf32>
    %11 = vector.broadcast %10 : vector<1x128xf32> to vector<8x128xf32>
    %12 = arith.addf %9, %11 : vector<8x128xf32>
    %13 = arith.truncf %12 : vector<8x128xf32> to vector<8x128xbf16>
    %14 = math.tanh %13 : vector<8x128xbf16>
    %c0_10 = arith.constant 0 : index
    %c0_11 = arith.constant 0 : index
    %15 = vector.load %arg6[%c0_10, %c0_11] : memref<128x2xbf16, #tpu.memory_space<vmem>>, vector<128x2xbf16>
    %cst_12 = arith.constant dense<0.000000e+00> : vector<8x2xf32>
    %16 = tpu.matmul %14, %15, %cst_12 {dimension_numbers = #tpu.dot_dimension_numbers<[1], [0], [0], [1], [0, 0, 1, 1], [], []>} : vector<8x128xbf16>, vector<128x2xbf16>, vector<8x2xf32> -> vector<8x2xf32>
    %c0_13 = arith.constant 0 : index
    %c0_14 = arith.constant 0 : index
    %17 = vector.load %arg7[%c0_13, %c0_14] : memref<1x2xf32, #tpu.memory_space<vmem>>, vector<1x2xf32>
    %18 = vector.broadcast %17 : vector<1x2xf32> to vector<8x2xf32>
    %19 = arith.addf %16, %18 : vector<8x2xf32>
    %20 = math.tanh %19 : vector<8x2xf32>
    %c0_15 = arith.constant 0 : index
    %c0_16 = arith.constant 0 : index
    %21 = vector.load %arg8[%c0_15, %c0_16] : memref<8x2xf32, #tpu.memory_space<vmem>>, vector<8x2xf32>
    tpu.vector_store %arg8[%c0_15, %c0_16], %20 {strides = array<i32>} : memref<8x2xf32, #tpu.memory_space<vmem>>, vector<8x2xf32>,
    return
  }
  func.func @transform_0(%arg0: i32) -> (i32, i32) {
    %c0_i32 = arith.constant 0 : i32
    %c0_i32_0 = arith.constant 0 : i32
    return %arg0, %c0_i32 : i32, i32
  }
  func.func @transform_1(%arg0: i32) -> (i32, i32) {
    %c0_i32 = arith.constant 0 : i32
    %c0_i32_0 = arith.constant 0 : i32
    %c0_i32_1 = arith.constant 0 : i32
    return %c0_i32, %c0_i32_0 : i32, i32
  }
  func.func @transform_2(%arg0: i32) -> (i32, i32) {
    %c0_i32 = arith.constant 0 : i32
    %c0_i32_0 = arith.constant 0 : i32
    %c0_i32_1 = arith.constant 0 : i32
    return %c0_i32, %c0_i32_0 : i32, i32
  }
  func.func @transform_3(%arg0: i32) -> (i32, i32) {
    %c0_i32 = arith.constant 0 : i32
    %c0_i32_0 = arith.constant 0 : i32
    %c0_i32_1 = arith.constant 0 : i32
    return %c0_i32, %c0_i32_0 : i32, i32
  }
  func.func @transform_4(%arg0: i32) -> (i32, i32) {
    %c0_i32 = arith.constant 0 : i32
    %c0_i32_0 = arith.constant 0 : i32
    %c0_i32_1 = arith.constant 0 : i32
    return %c0_i32, %c0_i32_0 : i32, i32
  }
  func.func @transform_5(%arg0: i32) -> (i32, i32) {
    %c0_i32 = arith.constant 0 : i32
    %c0_i32_0 = arith.constant 0 : i32
    %c0_i32_1 = arith.constant 0 : i32
    return %c0_i32, %c0_i32_0 : i32, i32
  }
  func.func @transform_6(%arg0: i32) -> (i32, i32) {
    %c0_i32 = arith.constant 0 : i32
    %c0_i32_0 = arith.constant 0 : i32
    %c0_i32_1 = arith.constant 0 : i32
    return %c0_i32, %c0_i32_0 : i32, i32
  }
  func.func @transform_7(%arg0: i32) -> (i32, i32) {
    %c0_i32 = arith.constant 0 : i32
    %c0_i32_0 = arith.constant 0 : i32
    return %arg0, %c0_i32 : i32, i32
  }
}

</mosaic_0001>

<bundles_post_ra>
// kernel: policy_net_forward.1
= control target key start
LH: loop header
LB: loop body
LE: loop exit
PB: predicated region body
PF: predicated region fallthrough
CT: control target
= control target key end

     0   :  { %vm40_vm0 = vcmask 1042432   ;;  %v427_v0 = vmov 0.0   ;;  %vm428_vm1 = vmmov 0   ;;  %vm36_vm2 = vcmask 48128   ;;  %s555_s1 = inlined_call_operand.vmem [shape: bf16[6,128], index: 1, kind: input, shape index: {}]   ;;  %s556_s0 = inlined_call_operand.vmem [shape: bf16[8,6], index: 0, kind: input, shape index: {}]   ;;  %s557_s3 = inlined_call_operand.vmem [shape: bf16[128,128], index: 3, kind: input, shape index: {}]   ;;  %s558_s5 = inlined_call_operand.vmem [shape: bf16[128,2], index: 5, kind: input, shape index: {}]   ;;  %s559_s2 = inlined_call_operand.vmem [shape: f32[1,128], index: 2, kind: input, shape index: {}]   ;;  %s560_s4 = inlined_call_operand.vmem [shape: f32[1,128], index: 4, kind: input, shape index: {}]   ;;  %s561_s6 = inlined_call_operand.vmem [shape: f32[1,2], index: 6, kind: input, shape index: {}]   ;;  %s562_s7 = inlined_call_operand.vmem [shape: f32[8,2], index: 7, kind: output, shape index: {}]  }
   0x1   :  { %357 = vmatprep.subr.bf16.mxu0 %v427_v0  ;;  %v28_v1 = vld [vmem:[%s555_s1] sm:$0x7]  ;;  %359 = vmatprep.mubr.msk.bf16.mxu0 %vm428_vm1, %v427_v0  ;;  %v406_v5 = vld [vmem:[%s557_s3 + $0x8] sm:$0xff]   ;;  %v407_v6 = vld [vmem:[%s557_s3 + $0x10] sm:$0xff]   ;;  %vm311_vm3 = vcmask 15360  }
   0x2   :  { %v42_v2 = vsel %vm40_vm0, %v28_v1, 0  ;;  %363 = vmatprep.subr.bf16.mxu1 %v427_v0  ;;  %v405_v3 = vld [vmem:[%s557_s3] sm:$0xff]   ;;  %379 = vmatprep.mubr.msk.bf16.mxu1 %vm428_vm1, %v427_v0  ;;  %v408_v7 = vld [vmem:[%s557_s3 + $0x18] sm:$0xff]   ;;  %v410_v9 = vld [vmem:[%s557_s3 + $0x28] sm:$0xff]  }
   0x3   :  { %358 = vmatpush3.bf16.msra.mxu0 %v42_v2  ;;  %v27_v4 = vld [vmem:[%s556_s0] sm:$0xf]  ;;  %364 = vmatpush3.bf16.msra.mxu1 %v405_v3  ;;  %v411_v10 = vld [vmem:[%s557_s3 + $0x30] sm:$0xff]   ;;  %v412_v11 = vld [vmem:[%s557_s3 + $0x38] sm:$0xff]  }
   0x4   :  { %383 = vmatprep.subr.bf16.mxu0 %v427_v0  ;;  %365 = vmatprep.subr.bf16.mxu1 %v427_v0  ;;  %v409_v8 = vld [vmem:[%s557_s3 + $0x20] sm:$0xff]   ;;  %v414_v13 = vld [vmem:[%s558_s5 + $0x8] sm:$0xff]   ;;  %v415_v14 = vld [vmem:[%s558_s5 + $0x10] sm:$0xff]  }
   0x5   :  { %v413_v12 = vld [vmem:[%s558_s5] sm:$0xff]   ;;  %v416_v15 = vld [vmem:[%s558_s5 + $0x18] sm:$0xff]   ;;  %v418_v25 = vld [vmem:[%s558_s5 + $0x28] sm:$0xff]  }
   0x6   :  { %360 = vmatmul.mubr.msk.bf16.vlgmr.msra.gmra.mrb[0].mxu0 %vm36_vm2, %v27_v4  ;;  %v317_v16 = vld [vmem:[%s559_s2] ss:$0 sm:$0xff]  ;;  %v419_v26 = vld [vmem:[%s558_s5 + $0x30] sm:$0xff]   ;;  %v420_v27 = vld [vmem:[%s558_s5 + $0x38] sm:$0xff]  }
   0x7   :  { %399 = vmatprep.mubr.msk.bf16.mxu0 %vm428_vm1, %v427_v0  ;;  %366 = vmatpush3.bf16.msra.mxu1 %v406_v5  ;;  %v417_v24 = vld [vmem:[%s558_s5 + $0x20] sm:$0xff]  }
   0x8   :  { %367 = vmatprep.subr.bf16.mxu1 %v427_v0  ;;  %384 = vmatpush3.bf16.msra.mxu0 %v413_v12  ;;  %v319_v28 = vld [vmem:[%s560_s4] ss:$0 sm:$0xff] }
   0x9   :  { %385 = vmatprep.subr.bf16.mxu0 %v427_v0  ;;  %v328_v36 = vld [vmem:[%s561_s6] ss:$0 sm:$0xff] }
   0xb   :  { %368 = vmatpush3.bf16.msra.mxu1 %v407_v6 }
   0xc   :  { %369 = vmatprep.subr.bf16.mxu1 %v427_v0  ;;  %386 = vmatpush3.bf16.msra.mxu0 %v414_v13 }
   0xd   :  { %387 = vmatprep.subr.bf16.mxu0 %v427_v0 }
   0xf   :  { %370 = vmatpush3.bf16.msra.mxu1 %v408_v7 }
  0x10   :  { %371 = vmatprep.subr.bf16.mxu1 %v427_v0  ;;  %388 = vmatpush3.bf16.msra.mxu0 %v415_v14 }
  0x11   :  { %389 = vmatprep.subr.bf16.mxu0 %v427_v0 }
  0x13   :  { %372 = vmatpush3.bf16.msra.mxu1 %v409_v8 }
  0x14   :  { %373 = vmatprep.subr.bf16.mxu1 %v427_v0  ;;  %390 = vmatpush3.bf16.msra.mxu0 %v416_v15 }
  0x15   :  { %391 = vmatprep.subr.bf16.mxu0 %v427_v0 }
  0x17   :  { %374 = vmatpush3.bf16.msra.mxu1 %v410_v9 }
  0x18   :  { %375 = vmatprep.subr.bf16.mxu1 %v427_v0  ;;  %392 = vmatpush3.bf16.msra.mxu0 %v417_v24 }
  0x19   :  { %393 = vmatprep.subr.bf16.mxu0 %v427_v0 }
  0x1b   :  { %376 = vmatpush3.bf16.msra.mxu1 %v411_v10 }
  0x1c   :  { %377 = vmatprep.subr.bf16.mxu1 %v427_v0  ;;  %394 = vmatpush3.bf16.msra.mxu0 %v418_v25 }
  0x1d   :  { %395 = vmatprep.subr.bf16.mxu0 %v427_v0 }
  0x1f   :  { %378 = vmatpush3.bf16.msra.mxu1 %v412_v11 }
  0x20   :  { %396 = vmatpush3.bf16.msra.mxu0 %v419_v26 }
  0x21   :  { %397 = vmatprep.subr.bf16.mxu0 %v427_v0 }
  0x24   :  { %398 = vmatpush3.bf16.msra.mxu0 %v420_v27 }
  0xd9   :  { %v78_v17 = vpop.f32.mrb[0].mxu0 }
  0xda   :  { %v79_v18 = vadd.f32 %v317_v16, %v78_v17  ;;  %v361_v19 = vpop.f32.mrb[1].mxu0 }
  0xdb   :  { %v81_v20 = vpop.f32.mrb[2].mxu0 }
  0xdc   :  { %v84_v21 = vpack.c.bf16 %v79_v18, %v79_v18  ;;  %v362_v22 = vpop.f32.mrb[3].mxu0 }
  0xde   :  { %421 = vtanh.bf16 %v84_v21 }
  0xe9   :  { %v422_v23 = vpop.eup %421 }
  0xea   :  { %380 = vmatmul.mubr.bf16.vlgmr.msra.gmra.mrb[0].mxu1 %v422_v23 }
 0x1bd   :  { %v191_v29 = vpop.f32.mrb[0].mxu1 }
 0x1be   :  { %v192_v30 = vadd.f32 %v319_v28, %v191_v29  ;;  %v381_v31 = vpop.f32.mrb[1].mxu1 }
 0x1bf   :  { %v194_v32 = vpop.f32.mrb[2].mxu1 }
 0x1c0   :  { %v197_v33 = vpack.c.bf16 %v192_v30, %v192_v30  ;;  %v382_v34 = vpop.f32.mrb[3].mxu1 }
 0x1c2   :  { %423 = vtanh.bf16 %v197_v33 }
 0x1cd   :  { %v424_v35 = vpop.eup %423 }
 0x1ce   :  { %400 = vmatmul.mubr.bf16.vlgmr.msra.gmra.mrb[4].mxu0 %v424_v35 }
 0x2a1   :  { %v304_v37 = vpop.f32.mrb[4].mxu0 }
 0x2a2   :  { %v305_v38 = vadd.f32 %v328_v36, %v304_v37  ;;  %v401_v39 = vpop.f32.mrb[5].mxu0 }
 0x2a3   :  { %v307_v40 = vpop.f32.mrb[6].mxu0 }
 0x2a4   :  { %425 = vtanh.f32 %v305_v38  ;;  %v402_v41 = vpop.f32.mrb[7].mxu0 }
 0x2ae   :  { %v426_v42 = vpop.eup %425 }
 0x2af   :  { %312 = vst.msk [vmem:[%s562_s7] sm:$0xff] %vm311_vm3, %v426_v42 }

</bundles_post_ra>
